<compile_context>
chip_gen: v5e
topology: v5e:2x2
jax: 0.10.0
libtpu: 0.0.40
codegen_flags: <defaults>
</compile_context>

<pallas_src>
import functools
import math

import jax
import jax.numpy as jnp
from jax.experimental import pallas as pl
from jax.experimental.pallas import tpu as pltpu

NEG_HALF_LOG_2PI = -0.5 * math.log(2.0 * math.pi)


def _round_up(a, b):
    return (a + b - 1) // b * b


# ---------------------------------------------------------------------------
# Prep kernel: softplus(rho)^2 for weights and bias, computed once per call
# (hoisted out of the per-batch-tile path).
# ---------------------------------------------------------------------------
def _softplus_sq_kernel(w_rho_ref, b_rho_ref, w_std2_ref, b_std2_ref):
    def sp2(r):
        # Numerically stable softplus: max(r,0) + log1p(exp(-|r|))
        sp = jnp.maximum(r, 0.0) + jnp.log1p(jnp.exp(-jnp.abs(r)))
        return jnp.square(sp)

    w_std2_ref[...] = sp2(w_rho_ref[...])
    b_std2_ref[...] = sp2(b_rho_ref[...])


# ---------------------------------------------------------------------------
# Main kernel: one (TM, TN) tile of the Bayesian dense layer.
# ---------------------------------------------------------------------------
def _mlp_layer_kernel(x_ref, w_mean_ref, w_std2_ref, b_mean_ref, b_std2_ref,
                      noise_ref, out_ref, kl_ref, *,
                      prior_var, activation, batch, n_out, tm, tn, mask):
    x = x_ref[...]                       # (TM, K) f32
    noise = noise_ref[...]               # (TM, TN) f32

    # Z_Mean = X @ W_mean + b_mean
    z_mean = jnp.dot(x, w_mean_ref[...],
                     preferred_element_type=jnp.float32) + b_mean_ref[...]

    # Z_Var = X^2 @ softplus(W_rho)^2 + softplus(b_rho)^2  (std2 precomputed)
    x2 = jnp.square(x)
    z_var = jnp.dot(x2, w_std2_ref[...],
                    preferred_element_type=jnp.float32) + b_std2_ref[...]
    z_std = jnp.sqrt(z_var)
    z = z_mean + z_std * noise

    # Prior variance: X^2 @ (prior_var * ones) + prior_var
    #               = prior_var * (rowsum(X^2) + 1)          -> no third matmul.
    prior_z_var = prior_var * (jnp.sum(x2, axis=1, keepdims=True) + 1.0)  # (TM,1)
    ratio = z_var * (1.0 / prior_z_var)                                   # (TM,TN)

    # Simplified KL: since z - z_mean = z_std*noise,
    #   log N(z; m, std) - log N(z; m, prior_std)
    #     = 0.5 * ( noise^2 * (ratio - 1) - log(ratio) )
    kl_elem = 0.5 * (jnp.square(noise) * (ratio - 1.0) - jnp.log(ratio))

    if mask:
        # Zero the contributions of rows/cols that only exist due to padding.
        i = pl.program_id(0)
        j = pl.program_id(1)
        row = i * tm + jax.lax.broadcasted_iota(jnp.int32, (tm, tn), 0)
        col = j * tn + jax.lax.broadcasted_iota(jnp.int32, (tm, tn), 1)
        kl_elem = jnp.where((row < batch) & (col < n_out), kl_elem, 0.0)

    kl_ref[0, 0] = jnp.sum(kl_elem)      # per-tile partial KL (SMEM scalar)

    out = jnp.maximum(z, 0.0) if activation == "relu" else z
    out_ref[...] = out.astype(out_ref.dtype)


# ---------------------------------------------------------------------------
# Wrapper: padding, tiling, pallas_call plumbing.
# ---------------------------------------------------------------------------
def mlp_layer_forward(x, w_mean, w_rho, b_mean, b_rho, noise, *,
                      prior_rho, activation="relu", tm=None, tn=None):
    """Pallas implementation of MLPLayer.forward(X, mode='forward')."""
    b, n_in = x.shape
    n_out = w_mean.shape[1]

    # self.prior_var = softplus(prior_rho) ** 2 (python-math constant, stable form)
    prior_var = float((max(prior_rho, 0.0)
                       + math.log1p(math.exp(-abs(prior_rho)))) ** 2)

    # --- tile sizes: lane-dense n_output tiles (multiple of 128), batch padded to 8
    n_pad = _round_up(n_out, 128)
    if tn is None:
        tn = 512 if n_pad % 512 == 0 else 256 if n_pad % 256 == 0 else 128
    tn = min(tn, n_pad)
    if n_pad % tn != 0:
        tn = 128
    if tm is None:
        tm = 128 if b >= 128 else _round_up(b, 8)
    tm = max(8, _round_up(tm, 8))
    b_pad = _round_up(b, tm)

    f32 = jnp.float32
    xp = jnp.pad(x.astype(f32), ((0, b_pad - b), (0, 0)))
    wm = jnp.pad(w_mean.astype(f32), ((0, 0), (0, n_pad - n_out)))
    wr = jnp.pad(w_rho.astype(f32), ((0, 0), (0, n_pad - n_out)))
    bm = jnp.pad(b_mean.astype(f32), ((0, 0), (0, n_pad - n_out)))
    br = jnp.pad(b_rho.astype(f32), ((0, 0), (0, n_pad - n_out)))
    nz = jnp.pad(noise.astype(f32), ((0, b_pad - b), (0, n_pad - n_out)))

    # --- prep kernel: softplus(rho)^2, once per call (not per batch tile)
    w_std2, b_std2 = pl.pallas_call(
        _softplus_sq_kernel,
        out_shape=(jax.ShapeDtypeStruct((n_in, n_pad), f32),
                   jax.ShapeDtypeStruct((1, n_pad), f32)),
        grid=(n_pad // tn,),
        in_specs=[pl.BlockSpec((n_in, tn), lambda j: (0, j)),
                  pl.BlockSpec((1, tn), lambda j: (0, j))],
        out_specs=(pl.BlockSpec((n_in, tn), lambda j: (0, j)),
                   pl.BlockSpec((1, tn), lambda j: (0, j))),
        compiler_params=pltpu.CompilerParams(
            dimension_semantics=("parallel",)),
    )(wr, br)

    # --- main kernel: grid over (batch tiles, output tiles)
    grid_i, grid_j = b_pad // tm, n_pad // tn
    need_mask = (b_pad != b) or (n_pad != n_out)
    kernel = functools.partial(_mlp_layer_kernel,
                               prior_var=prior_var, activation=activation,
                               batch=b, n_out=n_out, tm=tm, tn=tn,
                               mask=need_mask)

    # Explicit VMEM budget: double-buffered x, (w_mean, w_std2), (b_mean, b_std2),
    # noise and output tiles, plus generous compiler-scratch headroom.
    vmem_bytes = 4 * (2 * tm * n_in          # x
                      + 4 * n_in * tn        # w_mean + w_std2
                      + 4 * tn               # b_mean + b_std2
                      + 4 * tm * tn)         # noise + out
    vmem_bytes += 8 * 1024 * 1024

    out_p, kl_parts = pl.pallas_call(
        kernel,
        out_shape=(jax.ShapeDtypeStruct((b_pad, n_pad), f32),
                   jax.ShapeDtypeStruct((grid_i, grid_j), f32)),
        grid=(grid_i, grid_j),
        in_specs=[
            pl.BlockSpec((tm, n_in), lambda i, j: (i, 0)),   # x
            pl.BlockSpec((n_in, tn), lambda i, j: (0, j)),   # w_mean
            pl.BlockSpec((n_in, tn), lambda i, j: (0, j)),   # w_std2
            pl.BlockSpec((1, tn), lambda i, j: (0, j)),      # b_mean
            pl.BlockSpec((1, tn), lambda i, j: (0, j)),      # b_std2
            pl.BlockSpec((tm, tn), lambda i, j: (i, j)),     # noise
        ],
        out_specs=(
            pl.BlockSpec((tm, tn), lambda i, j: (i, j)),     # out (lane-dense)
            pl.BlockSpec((1, 1), lambda i, j: (i, j),        # per-tile KL scalar
                         memory_space=pltpu.MemorySpace.SMEM),
        ),
        compiler_params=pltpu.CompilerParams(
            dimension_semantics=("parallel", "parallel"),
            vmem_limit_bytes=vmem_bytes),
    )(xp, wm, w_std2, bm, b_std2, nz)

    out = out_p[:b, :n_out]
    if activation == "softmax":
        # TODO(synk): softmax is applied outside the kernel because the output
        # dimension is tiled; relu/none are fused in-kernel.
        out = jax.nn.softmax(out, axis=-1)
    layer_kl = jnp.sum(kl_parts)
    return out, layer_kl


if __name__ == "__main__":
    # Small shapes consistent with a dense Bayesian layer; chosen so the grid is
    # (3, 2) and the n_output padding/masking path is exercised.
    B, N_INPUT, N_OUTPUT = 24, 64, 144
    PRIOR_MEAN, PRIOR_RHO = 0.0, -3.0

    key = jax.random.PRNGKey(0)
    k_x, k_noise, k_wm, k_wr = jax.random.split(key, 4)
    x = jax.random.normal(k_x, (B, N_INPUT), dtype=jnp.float32)
    # TODO(synk): PyTorch samples noise via np.random.choice from a fixed
    # pre-drawn gaussian block; here noise is drawn with jax.random instead.
    noise = jax.random.normal(k_noise, (B, N_OUTPUT), dtype=jnp.float32)

    # __init__-style init (ones * prior_*) plus a small perturbation so the KL
    # and the mean matmul are non-trivial for the correctness check.
    w_mean = PRIOR_MEAN + 0.1 * jax.random.normal(k_wm, (N_INPUT, N_OUTPUT), jnp.float32)
    w_rho = PRIOR_RHO + 0.1 * jax.random.normal(k_wr, (N_INPUT, N_OUTPUT), jnp.float32)
    b_mean = jnp.ones((1, N_OUTPUT), jnp.float32) * PRIOR_MEAN
    b_rho = jnp.ones((1, N_OUTPUT), jnp.float32) * PRIOR_RHO

    out, layer_kl = mlp_layer_forward(x, w_mean, w_rho, b_mean, b_rho, noise,
                                      prior_rho=PRIOR_RHO, activation="relu",
                                      tm=8, tn=128)
    jax.block_until_ready((out, layer_kl))

    # Pure-JAX reference of the *original* (unsimplified) formulation.
    sp = jax.nn.softplus
    z_mean_ref = x @ w_mean + b_mean
    z_std_ref = jnp.sqrt(jnp.square(x) @ jnp.square(sp(w_rho)) + jnp.square(sp(b_rho)))
    z_ref = z_mean_ref + z_std_ref * noise
    pv = float(math.log(1.0 + math.exp(PRIOR_RHO)) ** 2)
    prior_std_ref = jnp.sqrt(jnp.square(x) @ jnp.full((N_INPUT, N_OUTPUT), pv, jnp.float32) + pv)
    lg = lambda v, m, s: NEG_HALF_LOG_2PI - jnp.log(s) - 0.5 * jnp.square(v - m) / jnp.square(s)
    kl_ref = jnp.sum(lg(z_ref, z_mean_ref, z_std_ref) - lg(z_ref, z_mean_ref, prior_std_ref))
    out_ref = jnp.maximum(z_ref, 0.0)

    assert out.shape == (B, N_OUTPUT)
    assert jnp.allclose(out, out_ref, atol=1e-3, rtol=1e-3), "output mismatch"
    assert jnp.allclose(layer_kl, kl_ref, atol=2e-2, rtol=1e-3), "KL mismatch"

    print("KERNEL_OK")
</pallas_src>

<mosaic_0001>
module attributes {stable_mosaic.version = 11 : i64} {
  func.func @_softplus_sq_kernel(%arg0: i32, %arg1: memref<64x128xf32, #tpu.memory_space<vmem>>, %arg2: memref<1x128xf32, #tpu.memory_space<vmem>>, %arg3: memref<64x128xf32, #tpu.memory_space<vmem>>, %arg4: memref<1x128xf32, #tpu.memory_space<vmem>>) attributes {dimension_semantics = [#tpu.dimension_semantics<parallel>], iteration_bounds = array<i64: 2>, scalar_prefetch = 0 : i64, scratch_operands = 0 : i64, tpu.core_type = #tpu.core_type<tc>, window_params = [{transform_indices = @transform_0, window_bounds = array<i64: 64, 128>}, {transform_indices = @transform_1, window_bounds = array<i64: 1, 128>}, {transform_indices = @transform_2, window_bounds = array<i64: 64, 128>}, {transform_indices = @transform_3, window_bounds = array<i64: 1, 128>}]} {
    %c0 = arith.constant 0 : index
    %c0_0 = arith.constant 0 : index
    %0 = vector.load %arg1[%c0, %c0_0] : memref<64x128xf32, #tpu.memory_space<vmem>>, vector<64x128xf32>
    %cst = arith.constant 0.000000e+00 : f32
    %1 = vector.broadcast %cst : f32 to vector<64x128xf32>
    %2 = arith.maximumf %0, %1 : vector<64x128xf32>
    %3 = math.absf %0 : vector<64x128xf32>
    %cst_1 = arith.constant 0.000000e+00 : f32
    %4 = vector.broadcast %cst_1 : f32 to vector<64x128xf32>
    %5 = arith.subf %4, %3 : vector<64x128xf32>
    %6 = math.exp %5 : vector<64x128xf32>
    %7 = math.log1p %6 : vector<64x128xf32>
    %8 = arith.addf %2, %7 : vector<64x128xf32>
    %9 = arith.mulf %8, %8 : vector<64x128xf32>
    %c0_2 = arith.constant 0 : index
    %c0_3 = arith.constant 0 : index
    %10 = vector.load %arg3[%c0_2, %c0_3] : memref<64x128xf32, #tpu.memory_space<vmem>>, vector<64x128xf32>
    tpu.vector_store %arg3[%c0_2, %c0_3], %9 {strides = array<i32>} : memref<64x128xf32, #tpu.memory_space<vmem>>, vector<64x128xf32>,
    %c0_4 = arith.constant 0 : index
    %c0_5 = arith.constant 0 : index
    %11 = vector.load %arg2[%c0_4, %c0_5] : memref<1x128xf32, #tpu.memory_space<vmem>>, vector<1x128xf32>
    %cst_6 = arith.constant 0.000000e+00 : f32
    %12 = vector.broadcast %cst_6 : f32 to vector<1x128xf32>
    %13 = arith.maximumf %11, %12 : vector<1x128xf32>
    %14 = math.absf %11 : vector<1x128xf32>
    %cst_7 = arith.constant 0.000000e+00 : f32
    %15 = vector.broadcast %cst_7 : f32 to vector<1x128xf32>
    %16 = arith.subf %15, %14 : vector<1x128xf32>
    %17 = math.exp %16 : vector<1x128xf32>
    %18 = math.log1p %17 : vector<1x128xf32>
    %19 = arith.addf %13, %18 : vector<1x128xf32>
    %20 = arith.mulf %19, %19 : vector<1x128xf32>
    %c0_8 = arith.constant 0 : index
    %c0_9 = arith.constant 0 : index
    %21 = vector.load %arg4[%c0_8, %c0_9] : memref<1x128xf32, #tpu.memory_space<vmem>>, vector<1x128xf32>
    tpu.vector_store %arg4[%c0_8, %c0_9], %20 {strides = array<i32>} : memref<1x128xf32, #tpu.memory_space<vmem>>, vector<1x128xf32>,
    return
  }
  func.func @transform_0(%arg0: i32) -> (i32, i32) {
    %c0_i32 = arith.constant 0 : i32
    %c0_i32_0 = arith.constant 0 : i32
    return %c0_i32, %arg0 : i32, i32
  }
  func.func @transform_1(%arg0: i32) -> (i32, i32) {
    %c0_i32 = arith.constant 0 : i32
    %c0_i32_0 = arith.constant 0 : i32
    return %c0_i32, %arg0 : i32, i32
  }
  func.func @transform_2(%arg0: i32) -> (i32, i32) {
    %c0_i32 = arith.constant 0 : i32
    %c0_i32_0 = arith.constant 0 : i32
    return %c0_i32, %arg0 : i32, i32
  }
  func.func @transform_3(%arg0: i32) -> (i32, i32) {
    %c0_i32 = arith.constant 0 : i32
    %c0_i32_0 = arith.constant 0 : i32
    return %c0_i32, %arg0 : i32, i32
  }
}

</mosaic_0001>

<bundles_post_ra>
// kernel: tpu_custom_call.1
= control target key start
LH: loop header
LB: loop body
LE: loop exit
PB: predicated region body
PF: predicated region fallthrough
CT: control target
= control target key end

     0   :  { %s1145_s0 = inlined_call_operand.hbm [shape: f32[64,256], index: 0, kind: input, shape index: {}]   ;;  %s1146_s1 = inlined_call_operand.hbm [shape: f32[1,256], index: 1, kind: input, shape index: {}]   ;;  %s1147_s2 = inlined_call_operand.hbm [shape: f32[64,256], index: 2, kind: output, shape index: {0}]   ;;  %s1148_s3 = inlined_call_operand.hbm [shape: f32[1,256], index: 3, kind: output, shape index: {1}]  }
   0x1   :  { %1149 = sst [smem:[#allocation14_spill]] %s1145_s0 }
   0x2   :  { %9 = vsyncpa [#allocation3], 0 }
   0x3   :  { %11 = vsyncpa [#allocation3 + $0x1], 0 }
   0x4   :  { %12 = vsyncpa [#allocation6], 0 }
   0x5   :  { %14 = vsyncpa [#allocation6 + $0x1], 0 }
   0x6   :  { %15 = vsyncpa [#allocation4], 0 }
   0x7   :  { %17 = vsyncpa [#allocation4 + $0x1], 0 }
   0x8   :  { %18 = vsyncpa [#allocation9], 0 }
   0x9   :  { %20 = vsyncpa [#allocation9 + $0x1], 0  ;;  %s849_s12 = smov 0   ;;  %s851_s13 = smov 0  }
   0xa   :  { %s853_s14 = smov 0   ;;  %s855_s15 = smov 0  }
   0xb LB: > { %s870_s16 = sadd.s32 4294967295, %s821_s15   ;;  %s549_s17 = sadd.s32 4294967294, %s821_s15   ;;  %s821_s15 = sphi %s855_s15, %s1172_s15   ;;  %s817_s14 = sphi %s853_s14, %s1171_s14   ;;  %s813_s13 = sphi %s851_s13, %s1170_s13   ;;  %s809_s12 = sphi %s849_s12, %s1169_s12  }
   0xc   : > { %s874_s18 = sadd.s32 1, %s821_s15   ;;  %s33_s19 = sadd.s32 1, %s817_s14 }
   0xd   : > { %s30_s20 = ssub.s32 %s821_s15, %s874_s18  ;;  %p40_p0 = scmp.ne.s32.totalorder %s817_s14, %s813_s13 }
   0xe   : > { %p31_p1 = scmp.eq.s32.totalorder %s30_s20, 0  ;;  %p41_p2 = scmp.eq.s32.totalorder %s821_s15, 0 }
   0xf   : > { %p46_p3 = scmp.ne.s32.totalorder %s813_s13, %s809_s12  ;;  %p47_p4 = scmp.eq.s32.totalorder %s870_s16, 0 }
  0x10   : > { %s886_s21 = scalar_select %p31_p1, %s817_s14, %s33_s19  }
  0x11   : > { %p888_p5 = por %p41_p2, %p40_p0  ;;  %p892_p6 = por %p47_p4, %p46_p3 }
  0x12   : > { %p96_p7 = scmp.eq.s32.totalorder %s870_s16, 1  ;;  %p102_p8 = scmp.eq.s32.totalorder %s549_s17, 1 }
  0x13   : > { %p551_p9 = scmp.ge.s32.totalorder %s821_s15, 2  ;;  %p583_p10 = scmp.lt.s32.totalorder %s821_s15, 2 }
  0x14   : > { %p899_p11 = por %p96_p7, %p40_p0  ;;  %p903_p12 = por %p102_p8, %p46_p3 }
  0x15   : > { %s908_s26 = sand.u32 1, %s817_s14   ;;  %s553_s27 = sshll.u32 %s821_s15, 3 }
  0x16   : > { %s552_s28 = sshll.u32 %s908_s26, 6  ;;  %s1154_s0 = sld [smem:[#allocation14_spill]] }
  0x17   : > { %s152_s6 = scalar_lea.vmem [#allocation2], %s552_s28  ;;  %p917_p13 = pnand %p583_p10, %p888_p5 }
  0x18   : > { %s159_s7 = sshll.u32 %s152_s6, 4  ;;  %p554_p0 = scmp.ge.s32.totalorder %s821_s15, 1  ;;  %s160_s7 = int_to_ptr.vmem [resolvable:$true] %s159_s7 }
  0x19   : > { %s149_s9 = scalar_lea.sflag [#allocation3], %s908_s26  ;;  %p663_p2 = pneg %p917_p13 }
  0x1c   : > { %s156_s4 = scalar_lea.hbm %s1154_s0, %s553_s27  ;;  %s666_s20 = scalar_lea.hbm %s1154_s0, 128 }
  0x1d   : > { %s157_s5 = sshll.u32 %s156_s4, 4  ;;  %s158_s5 = int_to_ptr.hbm [resolvable:$true] %s157_s5 }
  0x1e   : > { %s659_s10 = sshra.s32 %s158_s5, 4  ;;  %s660_s10 = int_to_ptr.hbm [resolvable:$true] %s659_s10 }
  0x1f   : > { %s661_s11 = scalar_lea.hbm %s660_s10, 64  ;;  %p667_p5 = scmp.lt.s32.totalorder %s660_s10, %s1154_s0 }
  0x20   : > { %p662_p1 = scmp.ne.s32.totalorder %s660_s10, %s661_s11  ;;  %p668_p7 = scmp.lt.s32.totalorder %s666_s20, %s661_s11 }
  0x22   : > { %p664_p3 = pnand %p663_p2, %p662_p1  ;;  %p669_p8 = por %p668_p7, %p667_p5 }
  0x24   : > { %p665_p4 = pneg %p664_p3 }
  0x26   : > { %p670_p10 = pnand %p669_p8, %p665_p4 }
  0x28   : > { %673 = shalt.err (!%p670_p10)
}
  0x29   : > { %s823_s28 = smov 256   ;;  %s824_s29 = smov 128  }
  0x2a   : > { %s825_s30 = smov 8   ;;  %p184_p1 = scmp.lt.s32.totalorder %s821_s15, 3 }
  0x2b   : > { %572 = dma.hbm_to_vmem [thread:$0]  (!%p917_p13), %s158_s5, 1024, %s160_s7, %s149_s9, %s823_s28, %s824_s29, %s825_s30  }
  0x2c   : > { %s175_s10 = scalar_lea.hbm %s1146_s1, %s821_s15  ;;  %p943_p3 = pnand %p554_p0, %p184_p1 }
  0x2d   : > { %s177_s17 = sshll.u32 %s175_s10, 4  ;;  %s172_s19 = scalar_lea.vmem [#allocation5], %s908_s26  ;;  %s178_s17 = int_to_ptr.hbm [resolvable:$true] %s177_s17 }
  0x2e   : > { %s179_s20 = sshll.u32 %s172_s19, 4  ;;  %s170_s22 = scalar_lea.sflag [#allocation6], %s908_s26  ;;  %s180_s20 = int_to_ptr.vmem [resolvable:$true] %s179_s20 }
  0x2f   : > { %s689_s27 = sshra.s32 %s178_s17, 4  ;;  %s696_s9 = scalar_lea.hbm %s1146_s1, 2  ;;  %s690_s27 = int_to_ptr.hbm [resolvable:$true] %s689_s27 }
  0x30   : > { %s691_s0 = scalar_lea.hbm %s690_s27, 1  ;;  %p697_p0 = scmp.lt.s32.totalorder %s690_s27, %s1146_s1 }
  0x31   : > { %p692_p4 = scmp.ne.s32.totalorder %s690_s27, %s691_s0  ;;  %p698_p8 = scmp.lt.s32.totalorder %s696_s9, %s691_s0 }
  0x33   : > { %p694_p5 = pnand %p692_p4, %p663_p2  ;;  %p699_p10 = por %p698_p8, %p697_p0 }
  0x35   : > { %p695_p7 = pneg %p694_p5 }
  0x37   : > { %p700_p1 = pnand %p699_p10, %p695_p7 }
  0x39   : > { %703 = shalt.err (!%p700_p1)
}
  0x3a   : > { %575 = dma.hbm_to_vmem [thread:$0]  (!%p917_p13), %s178_s17, 16, %s180_s20, %s170_s22  }
  0x3b   : > { %188 = sbr.rel (%p943_p3) target bundleno = 131 (0x83), region = 28  ;;  %s963_s26 = sand.u32 (!%p943_p3), 1, %s813_s13  }
  0x3c   : > { %s555_s30 = sshll.u32 (!%p943_p3), %s963_s26, 6  ;;  %s191_s4 = scalar_lea.sflag (!%p943_p3), [#allocation3], %s963_s26 }
  0x3d   : > { %s194_s0 = scalar_lea.vmem (!%p943_p3), [#allocation2], %s555_s30 }
  0x40   : > { %792 = dma.done.wait (%p892_p6), %s191_s4, 1024  }
  0x41   : > { %794 = vsyncadd (%p892_p6), %s191_s4, 4294966272  ;;  %s201_s8 = scalar_lea.sflag [#allocation6], %s963_s26  ;;  %s203_s6 = scalar_lea.vmem [#allocation5], %s963_s26 }
  0x42   : > { %796 = dma.done.wait (%p892_p6), %s201_s8, 16  }
  0x43   : > { %798 = vsyncadd (%p892_p6), %s201_s8, 4294967280  ;;  %v979_v0 = vld [vmem:[%s194_s0] sm:$0xff]  ;;  %v981_v1 = vld [vmem:[%s194_s0 + $0x8] sm:$0xff]  ;;  %s1060_s23 = scalar_lea.vmem [#allocation7], %s555_s30  ;;  %s558_s10 = sshll.u32 %s870_s16, 3 }
  0x44   : > { %v983_v2 = vld [vmem:[%s194_s0 + $0x10] sm:$0xff]  ;;  %v251_v3 = vand.u32 2147483647, %v979_v0  ;;  %v252_v4 = vand.u32 2147483647, %v981_v1  ;;  %v988_v6 = vld [vmem:[%s194_s0 + $0x18] sm:$0xff]  ;;  %s412_s19 = scalar_lea.hbm %s1147_s2, %s558_s10 }
  0x45   : > { %v253_v5 = vand.u32 2147483647, %v983_v2  ;;  %v990_v7 = vld [vmem:[%s194_s0 + $0x20] sm:$0xff]  ;;  %v254_v10 = vand.u32 2147483647, %v988_v6  ;;  %v993_v11 = vld [vmem:[%s194_s0 + $0x28] sm:$0xff] }
  0x46   : > { %v259_v8 = vsub.f32 0.0, %v251_v3  ;;  %v260_v9 = vsub.f32 0.0, %v252_v4  ;;  %v255_v13 = vand.u32 2147483647, %v990_v7  ;;  %v996_v14 = vld [vmem:[%s194_s0 + $0x30] sm:$0xff]  ;;  %v998_v15 = vld [vmem:[%s194_s0 + $0x38] sm:$0xff] }
  0x47   : > { %v261_v12 = vsub.f32 0.0, %v253_v5  ;;  %v262_v18 = vsub.f32 0.0, %v254_v10  ;;  %v256_v21 = vand.u32 2147483647, %v993_v11  ;;  %v257_v23 = vand.u32 2147483647, %v996_v14 }
  0x48   : > { %v267_v16 = vmul.f32 1.442695, %v259_v8  ;;  %v269_v17 = vmul.f32 1.442695, %v260_v9  ;;  %v263_v20 = vsub.f32 0.0, %v255_v13  ;;  %v243_v34 = vmax.f32 %v979_v0, 0.0 }
  0x49   : > { %v271_v19 = vmul.f32 1.442695, %v261_v12  ;;  %v273_v22 = vmul.f32 1.442695, %v262_v18  ;;  %v258_v24 = vand.u32 2147483647, %v998_v15 }
  0x4a   : > { %623 = vpow2.f32 %v267_v16  ;;  %v275_v25 = vmul.f32 1.442695, %v263_v20  ;;  %v264_v26 = vsub.f32 0.0, %v256_v21  ;;  %v1005_v27 = vld [vmem:[%s203_s6] sm:$0x1]  ;;  %v265_v28 = vsub.f32 0.0, %v257_v23 }
  0x4b   : > { %625 = vpow2.f32 %v269_v17  ;;  %v266_v29 = vsub.f32 0.0, %v258_v24  ;;  %v381_v31 = vand.u32 2147483647, %v1005_v27  ;;  %v244_v35 = vmax.f32 %v981_v1, 0.0  ;;  %s413_s20 = sshll.u32 %s1060_s23, 4  ;;  %s415_s22 = sshll.u32 %s412_s19, 4  ;;  %s1094_s20 = int_to_ptr.vmem [resolvable:$true] %s413_s20  ;;  %s416_s22 = int_to_ptr.hbm [resolvable:$true] %s415_s22 }
  0x4c   : > { %627 = vpow2.f32 %v271_v19  ;;  %v277_v30 = vmul.f32 1.442695, %v264_v26  ;;  %v279_v32 = vmul.f32 1.442695, %v265_v28  ;;  %v245_v36 = vmax.f32 %v983_v2, 0.0  ;;  %s398_s27 = scalar_lea.sflag [#allocation4], %s963_s26 }
  0x4d   : > { %629 = vpow2.f32 %v273_v22  ;;  %v281_v33 = vmul.f32 1.442695, %v266_v29  ;;  %v382_v37 = vsub.f32 0.0, %v381_v31  ;;  %v246_v39 = vmax.f32 %v988_v6, 0.0  ;;  %s733_s5 = sshra.s32 %s416_s22, 4  ;;  %s739_s29 = scalar_lea.hbm %s1147_s2, 128  ;;  %s734_s5 = int_to_ptr.hbm [resolvable:$true] %s733_s5 }
  0x4e   : > { %631 = vpow2.f32 %v275_v25  ;;  %v247_v40 = vmax.f32 %v990_v7, 0.0  ;;  %v248_v41 = vmax.f32 %v993_v11, 0.0  ;;  %s735_s7 = scalar_lea.hbm %s734_s5, 64  ;;  %p740_p3 = scmp.lt.s32.totalorder %s734_s5, %s1147_s2 }
  0x4f   : > { %633 = vpow2.f32 %v277_v30  ;;  %v1014_v53 = vmul.f32 1.442695, %v382_v37  ;;  %p736_p6 = scmp.ne.s32.totalorder %s734_s5, %s735_s7  ;;  %p741_p4 = scmp.lt.s32.totalorder %s739_s29, %s735_s7 }
  0x50   : > { %v624_v38 = vpop.eup %623  ;;  %635 = vpow2.f32 %v279_v32 }
  0x51   : > { %v626_v42 = vpop.eup %625  ;;  %v283_v43 = vadd.f32 1.0, %v624_v38  ;;  %v286_v44 = vmul.f32 -0.5, %v624_v38  ;;  %v289_v45 = vand.u32 2147483647, %v624_v38  ;;  %637 = vpow2.f32 %v281_v33  ;;  %p737_p13 = pnand %p736_p6, %p899_p11  ;;  %p742_p5 = por %p741_p4, %p740_p3 }
  0x52   : > { %v628_v46 = vpop.eup %627  ;;  %v292_v47 = vadd.f32 1.0, %v626_v42  ;;  %v295_v48 = vmul.f32 -0.5, %v626_v42  ;;  %v298_v49 = vand.u32 2147483647, %v626_v42 }
  0x53   : > { %v630_v50 = vpop.eup %629  ;;  %639 = vlog2.f32 %v283_v43  ;;  %v287_v51 = vadd.f32 1.0, %v286_v44  ;;  %v301_v52 = vadd.f32 1.0, %v628_v46  ;;  %vm1016_vm0 = vcmp.lt.f32.partialorder %v289_v45, 0.0004427343  ;;  %p738_p2 = pneg %p737_p13 }
  0x54   : > { %v632_v54 = vpop.eup %631  ;;  %641 = vlog2.f32 %v292_v47  ;;  %v296_v56 = vadd.f32 1.0, %v295_v48  ;;  %v304_v57 = vmul.f32 -0.5, %v628_v46  ;;  %vm1020_vm1 = vcmp.lt.f32.partialorder %v298_v49, 0.0004427343 }
  0x55   : > { %643 = vlog2.f32 %v301_v52  ;;  %v307_v59 = vand.u32 2147483647, %v628_v46  ;;  %v310_v60 = vadd.f32 1.0, %v630_v50  ;;  %v634_v61 = vpop.eup %633  ;;  %v288_v62 = vmul.f32 %v624_v38, %v287_v51  ;;  %p743_p7 = pnand %p742_p5, %p738_p2 }
  0x56   : > { %v305_v63 = vadd.f32 1.0, %v304_v57  ;;  %v313_v3 = vmul.f32 -0.5, %v630_v50  ;;  %v316_v4 = vand.u32 2147483647, %v630_v50  ;;  %v1024_v5 = vpop.eup %635  ;;  %v297_v8 = vmul.f32 %v626_v42, %v296_v56 }
  0x57   : > { %645 = vlog2.f32 %v310_v60  ;;  %v319_v9 = vadd.f32 1.0, %v632_v54  ;;  %v322_v10 = vmul.f32 -0.5, %v632_v54  ;;  %v1026_v12 = vpop.eup %637  ;;  %vm1028_vm2 = vcmp.lt.f32.partialorder %v307_v59, 0.0004427343 }
  0x58   : > { %v306_v13 = vmul.f32 %v628_v46, %v305_v63  ;;  %v314_v17 = vadd.f32 1.0, %v313_v3  ;;  %v325_v18 = vand.u32 2147483647, %v632_v54  ;;  %v328_v21 = vadd.f32 1.0, %v634_v61 }
  0x59   : > { %v640_v19 = vpop.eup %639  ;;  %647 = vlog2.f32 %v319_v9  ;;  %v323_v20 = vadd.f32 1.0, %v322_v10  ;;  %v331_v22 = vmul.f32 -0.5, %v634_v61  ;;  %vm1032_vm3 = vcmp.lt.f32.partialorder %v316_v4, 0.0004427343 }
  0x5a   : > { %v642_v23 = vpop.eup %641  ;;  %v285_v24 = vmul.f32 0.6931472, %v640_v19  ;;  %v315_v25 = vmul.f32 %v630_v50, %v314_v17  ;;  %vm1036_vm4 = vcmp.lt.f32.partialorder %v325_v18, 0.0004427343  ;;  %649 = vlog2.f32 %v328_v21 }
  0x5b   : > { %v644_v29 = vpop.eup %643  ;;  %v294_v30 = vmul.f32 0.6931472, %v642_v23  ;;  %v332_v31 = vadd.f32 1.0, %v331_v22  ;;  %v334_v32 = vand.u32 2147483647, %v634_v61  ;;  %v324_v38 = vmul.f32 %v632_v54, %v323_v20 }
  0x5c   : > { %v291_v33 = vsel %vm1016_vm0, %v288_v62, %v285_v24  ;;  %v303_v37 = vmul.f32 0.6931472, %v644_v29  ;;  %v337_v42 = vadd.f32 1.0, %v1024_v5  ;;  %v340_v47 = vmul.f32 -0.5, %v1024_v5 }
  0x5d   : > { %v646_v43 = vpop.eup %645  ;;  %v355_v44 = vadd.f32 %v291_v33, %v243_v34  ;;  %v300_v45 = vsel %vm1020_vm1, %v297_v8, %v294_v30  ;;  %v333_v46 = vmul.f32 %v634_v61, %v332_v31  ;;  %v343_v54 = vand.u32 2147483647, %v1024_v5 }
  0x5e   : > { %v356_v48 = vadd.f32 %v300_v45, %v244_v35  ;;  %v309_v49 = vsel %vm1028_vm2, %v306_v13, %v303_v37  ;;  %v312_v50 = vmul.f32 0.6931472, %v646_v43  ;;  %651 = vlog2.f32 %v337_v42 }
  0x5f   : > { %v648_v51 = vpop.eup %647  ;;  %v363_v52 = vmul.f32 %v355_v44, %v355_v44  ;;  %v357_v0 = vadd.f32 %v309_v49, %v245_v36  ;;  %v341_v34 = vadd.f32 1.0, %v340_v47  ;;  %v346_v1 = vadd.f32 1.0, %v1026_v12 }
  0x60   : > { %v364_v55 = vmul.f32 %v356_v48, %v356_v48  ;;  %v318_v56 = vsel %vm1032_vm3, %v315_v25, %v312_v50  ;;  %v321_v57 = vmul.f32 0.6931472, %v648_v51  ;;  %v650_v35 = vpop.eup %649  ;;  %vm1065_vm5 = vcmp.lt.f32.partialorder %v334_v32, 0.0004427343 }
  0x61   : > { %371 = vst [vmem:[%s1060_s23] sm:$0xff] %v363_v52  ;;  %v365_v2 = vmul.f32 %v357_v0, %v357_v0  ;;  %v358_v36 = vadd.f32 %v318_v56, %v246_v39  ;;  %v249_v59 = vmax.f32 %v996_v14, 0.0  ;;  %v330_v61 = vmul.f32 0.6931472, %v650_v35 }
  0x62   : > { %372 = vst [vmem:[%s1060_s23 + $0x8] sm:$0xff] %v364_v55  ;;  %v327_v60 = vsel %vm1036_vm4, %v324_v38, %v321_v57  ;;  %653 = vlog2.f32 %v346_v1  ;;  %v349_v62 = vmul.f32 -0.5, %v1026_v12  ;;  %v342_v63 = vmul.f32 %v1024_v5, %v341_v34 }
  0x63   : > { %373 = vst [vmem:[%s1060_s23 + $0x10] sm:$0xff] %v365_v2  ;;  %v366_v6 = vmul.f32 %v358_v36, %v358_v36  ;;  %v359_v39 = vadd.f32 %v327_v60, %v247_v40  ;;  %655 = vpow2.f32 %v1014_v53  ;;  %v336_v3 = vsel %vm1065_vm5, %v333_v46, %v330_v61 }
  0x64   : > { %v652_v14 = vpop.eup %651  ;;  %vm344_vm6 = vcmp.lt.f32.partialorder %v343_v54, 0.0004427343  ;;  %v350_v4 = vadd.f32 1.0, %v349_v62  ;;  %v352_v8 = vand.u32 2147483647, %v1026_v12  ;;  %v360_v7 = vadd.f32 %v336_v3, %v248_v41 }
  0x65   : > { %374 = vst [vmem:[%s1060_s23 + $0x18] sm:$0xff] %v366_v6  ;;  %v367_v9 = vmul.f32 %v359_v39, %v359_v39  ;;  %v339_v40 = vmul.f32 0.6931472, %v652_v14  ;;  %v250_v17 = vmax.f32 %v998_v15, 0.0 }
  0x66   : > { %v368_v5 = vmul.f32 %v360_v7, %v360_v7  ;;  %v351_v10 = vmul.f32 %v1026_v12, %v350_v4  ;;  %vm353_vm7 = vcmp.lt.f32.partialorder %v352_v8, 0.0004427343 }
  0x67   : > { %375 = vst [vmem:[%s1060_s23 + $0x20] sm:$0xff] %v367_v9  ;;  %v345_v53 = vsel %vm344_vm6, %v342_v63, %v339_v40 }
  0x68   : > { %v654_v13 = vpop.eup %653  ;;  %v361_v16 = vadd.f32 %v345_v53, %v249_v59  ;;  %376 = vst [vmem:[%s1060_s23 + $0x28] sm:$0xff] %v368_v5 }
  0x69   : > { %v656_v18 = vpop.eup %655  ;;  %v348_v11 = vmul.f32 0.6931472, %v654_v13 }
  0x6a   : > { %v369_v41 = vmul.f32 %v361_v16, %v361_v16  ;;  %v385_v19 = vadd.f32 1.0, %v656_v18  ;;  %v388_v20 = vmul.f32 -0.5, %v656_v18  ;;  %v391_v23 = vand.u32 2147483647, %v656_v18 }
  0x6b   : > { %v354_v12 = vsel %vm353_vm7, %v351_v10, %v348_v11 }
  0x6c   : > { %377 = vst [vmem:[%s1060_s23 + $0x30] sm:$0xff] %v369_v41  ;;  %v362_v15 = vadd.f32 %v354_v12, %v250_v17  ;;  %657 = vlog2.f32 %v385_v19  ;;  %v389_v21 = vadd.f32 1.0, %v388_v20 }
  0x6e   : > { %v370_v22 = vmul.f32 %v362_v15, %v362_v15  ;;  %v390_v24 = vmul.f32 %v656_v18, %v389_v21 }
  0x70   : > { %378 = vst [vmem:[%s1060_s23 + $0x38] sm:$0xff] %v370_v22 }
  0x71   : > { %746 = shalt.err (!%p743_p7)
}
  0x72   : > { %s826_s0 = smov 128   ;;  %s827_s8 = smov 256   ;;  %v658_v25 = vpop.eup %657  ;;  %v380_v26 = vmax.f32 %v1005_v27, 0.0  ;;  %vm392_vm8 = vcmp.lt.f32.partialorder %v391_v23, 0.0004427343 }
  0x73   : > { %s828_s6 = smov 8   ;;  %s427_s11 = scalar_lea.hbm %s1148_s3, %s870_s16  ;;  %v387_v28 = vmul.f32 0.6931472, %v658_v25 }
  0x74   : > { %565 = dma.vmem_to_hbm [thread:$0]  (%p899_p11), %s1094_s20, 1024, %s416_s22, %s398_s27, %s826_s0, %s827_s8, %s828_s6  }
  0x75   : > { %s234_s17 = scalar_lea.vmem [#allocation8], %s963_s26  ;;  %v393_v29 = vsel %vm392_vm8, %v390_v24, %v387_v28  ;;  %s431_s5 = sshll.u32 %s427_s11, 4  ;;  %s432_s5 = int_to_ptr.hbm [resolvable:$true] %s431_s5 }
  0x76   : > { %s429_s19 = sshll.u32 %s234_s17, 4  ;;  %v394_v30 = vadd.f32 %v393_v29, %v380_v26  ;;  %s403_s20 = scalar_lea.sflag [#allocation9], %s963_s26  ;;  %s430_s19 = int_to_ptr.vmem [resolvable:$true] %s429_s19 }
  0x77   : > { %s761_s22 = sshra.s32 %s432_s5, 4  ;;  %s767_s9 = scalar_lea.hbm %s1148_s3, 2  ;;  %s762_s22 = int_to_ptr.hbm [resolvable:$true] %s761_s22 }
  0x78   : > { %v395_v31 = vmul.f32 %v394_v30, %v394_v30  ;;  %s763_s27 = scalar_lea.hbm %s762_s22, 1  ;;  %p768_p1 = scmp.lt.s32.totalorder %s762_s22, %s1148_s3 }
  0x79   : > { %p764_p0 = scmp.ne.s32.totalorder %s762_s22, %s763_s27  ;;  %p769_p6 = scmp.lt.s32.totalorder %s767_s9, %s763_s27 }
  0x7a   : > { %396 = vst [vmem:[%s234_s17] sm:$0x1] %v395_v31 }
  0x7b   : > { %p765_p8 = pnand %p764_p0, %p899_p11  ;;  %p770_p13 = por %p769_p6, %p768_p1 }
  0x7d   : > { %p766_p10 = pneg %p765_p8 }
  0x7f   : > { %p771_p2 = pnand %p770_p13, %p766_p10 }
  0x81   : > { %774 = shalt.err (!%p771_p2)
}
  0x82   : > { %566 = dma.vmem_to_hbm [thread:$0]  (%p899_p11), %s430_s19, 16, %s432_s5, %s403_s20  }
  0x83 PF: > { %s443_s26 = sand.u32 1, %s809_s12   ;;  %p577_p3 = pnand %p551_p9, %p903_p12 }
  0x84   : > { %s444_s30 = scalar_lea.sflag [#allocation4], %s443_s26 }
  0x85   : > { %p578_p4 = pneg %p577_p3 }
  0x87   : > { %800 = dma.done.wait (%p578_p4), %s444_s30, 1024  }
  0x88   : > { %802 = vsyncadd (%p578_p4), %s444_s30, 4294966272  ;;  %s454_s4 = scalar_lea.sflag [#allocation9], %s443_s26 }
  0x89   : > { %804 = dma.done.wait (%p578_p4), %s454_s4, 16  }
  0x8a   : > { %806 = vsyncadd (%p578_p4), %s454_s4, 4294967280  ;;  %p23_p11 = scmp.ge.s32.totalorder %s874_s18, 4   ;;  %s1169_s12 = smov %s813_s13 }
  0x8b   : > { %s1170_s13 = smov %s817_s14  ;;  %s1171_s14 = smov %s886_s21 }
  0x8c   : > { %s1172_s15 = smov %s874_s18  ;;  %25 = sbr.rel (!%p23_p11) target bundleno = 11 (0xb), region = 103 }
  0x91   :  { %459 = vsyncpa [#allocation3], 1 }
  0x92   :  { %461 = vsyncpa [#allocation3 + $0x1], 1 }
  0x93   :  { %462 = vsyncpa [#allocation6], 1 }
  0x94   :  { %464 = vsyncpa [#allocation6 + $0x1], 1 }
  0x95   :  { %465 = vsyncpa [#allocation4], 1 }
  0x96   :  { %467 = vsyncpa [#allocation4 + $0x1], 1 }
  0x97   :  { %468 = vsyncpa [#allocation9], 1 }
  0x98   :  { %470 = vsyncpa [#allocation9 + $0x1], 1 }

</bundles_post_ra>
